<compile_context>
chip_gen: v5e
topology: v5e:2x2
jax: 0.10.0
libtpu: 0.0.40
codegen_flags: <defaults>
</compile_context>

<pallas_src>
import jax
import jax.numpy as jnp
import numpy as np
from jax.experimental import pallas as pl
from jax.experimental.pallas import tpu as pltpu


def graph_model_kernel(a_ref, x_ref, wb1_ref, w2b2_ref, out_ref):
    # Per grid step (one graph-batch): a_ref [N,N], x_ref [N,F],
    # wb1_ref [F+1,H], w2b2_ref [2H+1,OUT], out_ref [G,OUT].
    N, F = x_ref.shape
    H = wb1_ref.shape[1]
    G, OUT = out_ref.shape
    npg = N // G  # nodes per graph (contiguous, equal-size blocks)

    # --- unpack packed parameter slabs (static slices, no extra DMAs) --------
    w1 = wb1_ref[0:F, :]                  # [F, H]
    b1 = wb1_ref[F:F + 1, :]              # [1, H]
    w2_add = w2b2_ref[0:H, :]             # [H, OUT]  (mean slab already folded in)
    w2_max = w2b2_ref[H:2 * H, :]         # [H, OUT]
    b2 = w2b2_ref[2 * H:2 * H + 1, :]     # [1, OUT]

    # --- GCN layer: h = relu((A_norm @ X) @ W1 + b1) -------------------------
    # Aggregate-then-transform ordering: inner factor of the N^2 matmul is F<H.
    ax = jnp.dot(a_ref[...], x_ref[...], preferred_element_type=jnp.float32)  # [N, F]
    h = jnp.dot(ax, w1, preferred_element_type=jnp.float32) + b1              # [N, H]
    h = jnp.maximum(h, 0.0)

    # --- GraphPool 'mean_add_max' via reshape segment reductions -------------
    # Contiguous equal-size node blocks -> sublane-axis reductions; the mean
    # pool is realized through the pre-scaled W2 slab (no p_mean tensor).
    hseg = h.reshape(G, npg, H)                                               # [G, npg, H]
    p_add = jnp.sum(hseg, axis=1)                                             # [G, H]
    p_max = jnp.max(hseg, axis=1)                                             # [G, H]

    # --- Post FC: ReLU(Linear(concat[mean,add,max])) without concat/mean ------
    # pooled @ W2 == p_add @ (W2_mean/npg + W2_add) + p_max @ W2_max
    y = (jnp.dot(p_add, w2_add, preferred_element_type=jnp.float32)
         + jnp.dot(p_max, w2_max, preferred_element_type=jnp.float32)
         + b2)
    out_ref[...] = jnp.maximum(y, 0.0)                                        # [G, OUT]


def pack_params(w1, b1, w2, b2, *, nodes_per_graph):
    """Pack parameters once at init time (hoisted out of the forward path).

    The 'mean' slab of W2 is pre-scaled by 1/nodes_per_graph and folded into
    the 'add' slab, removing one matmul per call inside the kernel.
    """
    H = w1.shape[1]
    wb1 = jnp.concatenate([w1, b1], axis=0)                        # [F+1, H]
    w2_mean, w2_add, w2_max = w2[:H], w2[H:2 * H], w2[2 * H:3 * H]
    w2_ma = w2_mean * (1.0 / nodes_per_graph) + w2_add             # mean folded into add
    w2b2 = jnp.concatenate([w2_ma, w2_max, b2], axis=0)            # [2H+1, OUT]
    return wb1, w2b2


def graph_model_forward(a_norm, x, wb1, w2b2, *, num_graphs):
    """a_norm: [B,N,N], x: [B,N,F] -> [B, num_graphs, OUT]."""
    B, N, F = x.shape
    H = wb1.shape[1]
    OUT = w2b2.shape[1]
    G = num_graphs
    assert a_norm.shape == (B, N, N)
    assert N % G == 0, "graphs must have equal, contiguous node blocks"
    assert wb1.shape == (F + 1, H)
    assert w2b2.shape == (2 * H + 1, OUT)

    return pl.pallas_call(
        graph_model_kernel,
        out_shape=jax.ShapeDtypeStruct((B, G, OUT), jnp.float32),
        grid=(B,),
        in_specs=[
            # Per-step graph-batch operands (leading batch dim squeezed away).
            pl.BlockSpec((None, N, N), lambda b: (b, 0, 0)),
            pl.BlockSpec((None, N, F), lambda b: (b, 0, 0)),
            # Weight slabs: constant index_map -> DMA'd once, resident after.
            pl.BlockSpec((F + 1, H), lambda b: (0, 0)),
            pl.BlockSpec((2 * H + 1, OUT), lambda b: (0, 0)),
        ],
        out_specs=pl.BlockSpec((None, G, OUT), lambda b: (b, 0, 0)),
        compiler_params=pltpu.CompilerParams(
            dimension_semantics=("parallel",)),
    )(a_norm, x, wb1, w2b2)


def reference_forward(a_norm, x, w1, b1, w2, b2, batch, num_graphs):
    # General (batch-vector driven) formulation used as the correctness oracle.
    with jax.default_matmul_precision("highest"):
        h = jnp.maximum(a_norm @ x @ w1 + b1, 0.0)
        seg = (batch[None, :] == jnp.arange(num_graphs)[:, None]).astype(jnp.float32)
        counts = seg.sum(axis=1, keepdims=True)
        p_add = seg @ h
        p_mean = p_add / counts
        p_max = jnp.max(
            jnp.where(seg[:, :, None] > 0.0, h[None, :, :], -jnp.inf), axis=1)
        pooled = jnp.concatenate([p_mean, p_add, p_max], axis=1)
        return jnp.maximum(pooled @ w2 + b2, 0.0)


def build_batch_adjacency(num_graphs, nodes_per_graph, variant):
    """Ring per graph plus one deterministic per-batch chord; GCN-normalized."""
    n = num_graphs * nodes_per_graph
    a = np.zeros((n, n), np.float32)
    for g in range(num_graphs):
        off = g * nodes_per_graph
        for i in range(nodes_per_graph):
            j = off + i
            k = off + (i + 1) % nodes_per_graph
            a[j, k] = 1.0
            a[k, j] = 1.0
        u = off + (variant % nodes_per_graph)
        v = off + ((variant + 3) % nodes_per_graph)
        a[u, v] = 1.0
        a[v, u] = 1.0
    a_hat = a + np.eye(n, dtype=np.float32)
    d_inv_sqrt = 1.0 / np.sqrt(a_hat.sum(axis=1))
    return jnp.asarray(d_inv_sqrt[:, None] * a_hat * d_inv_sqrt[None, :])


if __name__ == "__main__":
    # Small synthetic workload: B independent graph-batches, each with
    # G graphs of 8 nodes, fused behind a single pallas_call grid.
    B = 8                     # graph-batches per kernel launch (parallel grid axis)
    G = 2                     # graphs per batch
    NODES_PER_GRAPH = 8
    N = G * NODES_PER_GRAPH   # nodes per graph-batch
    F = 4                     # _node_features_len
    # _edge_features_len = 4  # unused by the GCN layer (see TODO above)
    H = 32                    # GCN hidden size (graph model n_out)
    OUT = 256                 # post-FC output size (multiple of 128: lane-dense)

    a_norm = jnp.stack(
        [build_batch_adjacency(G, NODES_PER_GRAPH, b) for b in range(B)])   # [B,N,N]

    # Deterministic parameters / node features.
    key = jax.random.PRNGKey(0)
    k1, k2, k3, k4, k5 = jax.random.split(key, 5)
    x = jax.random.normal(k1, (B, N, F), jnp.float32)
    w1 = jax.random.normal(k2, (F, H), jnp.float32) / jnp.sqrt(F)
    b1 = 0.01 * jax.random.normal(k3, (1, H), jnp.float32)
    w2 = jax.random.normal(k4, (3 * H, OUT), jnp.float32) / jnp.sqrt(3 * H)
    b2 = 0.01 * jax.random.normal(k5, (1, OUT), jnp.float32)

    # Pack parameters ONCE (init-time), not per forward call.
    wb1, w2b2 = pack_params(w1, b1, w2, b2, nodes_per_graph=NODES_PER_GRAPH)

    out = graph_model_forward(a_norm, x, wb1, w2b2, num_graphs=G)
    out = jax.block_until_ready(out)

    # Correctness oracle: general batch-vector formulation, per graph-batch.
    batch_vec = jnp.repeat(jnp.arange(G), NODES_PER_GRAPH)
    ref = jnp.stack([
        reference_forward(a_norm[b], x[b], w1, b1, w2, b2, batch_vec, G)
        for b in range(B)])

    assert out.shape == (B, G, OUT), out.shape
    assert jnp.allclose(out, ref, atol=1e-3, rtol=1e-3), "mismatch vs reference"

    print("KERNEL_OK")
</pallas_src>

<mosaic_0001>
module attributes {stable_mosaic.version = 11 : i64} {
  func.func @graph_model_kernel(%arg0: i32, %arg1: memref<1x16x16xf32, #tpu.memory_space<vmem>>, %arg2: memref<1x16x4xf32, #tpu.memory_space<vmem>>, %arg3: memref<5x32xf32, #tpu.memory_space<vmem>>, %arg4: memref<65x256xf32, #tpu.memory_space<vmem>>, %arg5: memref<1x2x256xf32, #tpu.memory_space<vmem>>) attributes {dimension_semantics = [#tpu.dimension_semantics<parallel>], iteration_bounds = array<i64: 8>, scalar_prefetch = 0 : i64, scratch_operands = 0 : i64, tpu.core_type = #tpu.core_type<tc>, window_params = [{transform_indices = @transform_0, window_bounds = array<i64: 1, 16, 16>}, {transform_indices = @transform_1, window_bounds = array<i64: 1, 16, 4>}, {pipeline_mode = #tpu.pipeline_mode<synchronous>, transform_indices = @transform_2, window_bounds = array<i64: 5, 32>}, {pipeline_mode = #tpu.pipeline_mode<synchronous>, transform_indices = @transform_3, window_bounds = array<i64: 65, 256>}, {transform_indices = @transform_4, window_bounds = array<i64: 1, 2, 256>}]} {
    %c0 = arith.constant 0 : index
    %c0_0 = arith.constant 0 : index
    %0 = vector.load %arg3[%c0, %c0_0] : memref<5x32xf32, #tpu.memory_space<vmem>>, vector<4x32xf32>
    %c4 = arith.constant 4 : index
    %c0_1 = arith.constant 0 : index
    %1 = vector.load %arg3[%c4, %c0_1] : memref<5x32xf32, #tpu.memory_space<vmem>>, vector<1x32xf32>
    %c0_2 = arith.constant 0 : index
    %c0_3 = arith.constant 0 : index
    %2 = vector.load %arg4[%c0_2, %c0_3] : memref<65x256xf32, #tpu.memory_space<vmem>>, vector<32x256xf32>
    %c32 = arith.constant 32 : index
    %c0_4 = arith.constant 0 : index
    %3 = vector.load %arg4[%c32, %c0_4] : memref<65x256xf32, #tpu.memory_space<vmem>>, vector<32x256xf32>
    %c64 = arith.constant 64 : index
    %c0_5 = arith.constant 0 : index
    %4 = vector.load %arg4[%c64, %c0_5] : memref<65x256xf32, #tpu.memory_space<vmem>>, vector<1x256xf32>
    %c0_6 = arith.constant 0 : index
    %c0_7 = arith.constant 0 : index
    %c0_8 = arith.constant 0 : index
    %5 = vector.load %arg1[%c0_6, %c0_7, %c0_8] : memref<1x16x16xf32, #tpu.memory_space<vmem>>, vector<1x16x16xf32>
    %6 = vector.shape_cast %5 : vector<1x16x16xf32> to vector<16x16xf32>
    %c0_9 = arith.constant 0 : index
    %c0_10 = arith.constant 0 : index
    %c0_11 = arith.constant 0 : index
    %7 = vector.load %arg2[%c0_9, %c0_10, %c0_11] : memref<1x16x4xf32, #tpu.memory_space<vmem>>, vector<1x16x4xf32>
    %8 = vector.shape_cast %7 : vector<1x16x4xf32> to vector<16x4xf32>
    %cst = arith.constant dense<0.000000e+00> : vector<16x4xf32>
    %9 = tpu.matmul %6, %8, %cst {dimension_numbers = #tpu.dot_dimension_numbers<[1], [0], [0], [1], [0, 0, 1, 1], [], []>} : vector<16x16xf32>, vector<16x4xf32>, vector<16x4xf32> -> vector<16x4xf32>
    %cst_12 = arith.constant dense<0.000000e+00> : vector<16x32xf32>
    %10 = tpu.matmul %9, %0, %cst_12 {dimension_numbers = #tpu.dot_dimension_numbers<[1], [0], [0], [1], [0, 0, 1, 1], [], []>} : vector<16x4xf32>, vector<4x32xf32>, vector<16x32xf32> -> vector<16x32xf32>
    %11 = vector.broadcast %1 : vector<1x32xf32> to vector<16x32xf32>
    %12 = arith.addf %10, %11 : vector<16x32xf32>
    %cst_13 = arith.constant 0.000000e+00 : f32
    %13 = vector.broadcast %cst_13 : f32 to vector<16x32xf32>
    %14 = arith.maximumf %12, %13 : vector<16x32xf32>
    %15 = vector.shape_cast %14 : vector<16x32xf32> to vector<2x8x32xf32>
    %cst_14 = arith.constant dense<0.000000e+00> : vector<2x32xf32>
    %16 = vector.multi_reduction <add>, %15, %cst_14 [1] : vector<2x8x32xf32> to vector<2x32xf32>
    %cst_15 = arith.constant dense<0xFF800000> : vector<2x32xf32>
    %17 = vector.multi_reduction <maximumf>, %15, %cst_15 [1] : vector<2x8x32xf32> to vector<2x32xf32>
    %cst_16 = arith.constant dense<0.000000e+00> : vector<2x256xf32>
    %18 = tpu.matmul %16, %2, %cst_16 {dimension_numbers = #tpu.dot_dimension_numbers<[1], [0], [0], [1], [0, 0, 1, 1], [], []>} : vector<2x32xf32>, vector<32x256xf32>, vector<2x256xf32> -> vector<2x256xf32>
    %cst_17 = arith.constant dense<0.000000e+00> : vector<2x256xf32>
    %19 = tpu.matmul %17, %3, %cst_17 {dimension_numbers = #tpu.dot_dimension_numbers<[1], [0], [0], [1], [0, 0, 1, 1], [], []>} : vector<2x32xf32>, vector<32x256xf32>, vector<2x256xf32> -> vector<2x256xf32>
    %20 = arith.addf %18, %19 : vector<2x256xf32>
    %21 = vector.broadcast %4 : vector<1x256xf32> to vector<2x256xf32>
    %22 = arith.addf %20, %21 : vector<2x256xf32>
    %cst_18 = arith.constant 0.000000e+00 : f32
    %23 = vector.broadcast %cst_18 : f32 to vector<2x256xf32>
    %24 = arith.maximumf %22, %23 : vector<2x256xf32>
    %c0_19 = arith.constant 0 : index
    %c0_20 = arith.constant 0 : index
    %c0_21 = arith.constant 0 : index
    %25 = vector.load %arg5[%c0_19, %c0_20, %c0_21] : memref<1x2x256xf32, #tpu.memory_space<vmem>>, vector<1x2x256xf32>
    %26 = vector.shape_cast %25 : vector<1x2x256xf32> to vector<2x256xf32>
    %27 = vector.shape_cast %24 : vector<2x256xf32> to vector<1x2x256xf32>
    tpu.vector_store %arg5[%c0_19, %c0_20, %c0_21], %27 {strides = array<i32>} : memref<1x2x256xf32, #tpu.memory_space<vmem>>, vector<1x2x256xf32>,
    return
  }
  func.func @transform_0(%arg0: i32) -> (i32, i32, i32) {
    %c0_i32 = arith.constant 0 : i32
    %c0_i32_0 = arith.constant 0 : i32
    %c0_i32_1 = arith.constant 0 : i32
    return %arg0, %c0_i32, %c0_i32_0 : i32, i32, i32
  }
  func.func @transform_1(%arg0: i32) -> (i32, i32, i32) {
    %c0_i32 = arith.constant 0 : i32
    %c0_i32_0 = arith.constant 0 : i32
    %c0_i32_1 = arith.constant 0 : i32
    return %arg0, %c0_i32, %c0_i32_0 : i32, i32, i32
  }
  func.func @transform_2(%arg0: i32) -> (i32, i32) {
    %c0_i32 = arith.constant 0 : i32
    %c0_i32_0 = arith.constant 0 : i32
    %c0_i32_1 = arith.constant 0 : i32
    return %c0_i32, %c0_i32_0 : i32, i32
  }
  func.func @transform_3(%arg0: i32) -> (i32, i32) {
    %c0_i32 = arith.constant 0 : i32
    %c0_i32_0 = arith.constant 0 : i32
    %c0_i32_1 = arith.constant 0 : i32
    return %c0_i32, %c0_i32_0 : i32, i32
  }
  func.func @transform_4(%arg0: i32) -> (i32, i32, i32) {
    %c0_i32 = arith.constant 0 : i32
    %c0_i32_0 = arith.constant 0 : i32
    %c0_i32_1 = arith.constant 0 : i32
    return %arg0, %c0_i32, %c0_i32_0 : i32, i32, i32
  }
}

</mosaic_0001>

<bundles_post_ra>
// kernel: tpu_custom_call.1
= control target key start
LH: loop header
LB: loop body
LE: loop exit
PB: predicated region body
PF: predicated region fallthrough
CT: control target
= control target key end

     0   :  { %9 = vsyncpa [#allocation3], 0  ;;  %s963_s0 = inlined_call_operand.hbm [shape: f32[8,16,16], index: 0, kind: input, shape index: {}]   ;;  %s964_s1 = inlined_call_operand.vmem [shape: f32[8,16,4], index: 1, kind: input, shape index: {}]   ;;  %s965_s2 = inlined_call_operand.vmem [shape: f32[5,32], index: 2, kind: input, shape index: {}]   ;;  %s966_s3 = inlined_call_operand.vmem [shape: f32[65,256], index: 3, kind: input, shape index: {}]   ;;  %s967_s4 = inlined_call_operand.hbm [shape: f32[8,2,256], index: 4, kind: output, shape index: {}]  }
   0x1   :  { %11 = vsyncpa [#allocation3 + $0x1], 0 }
   0x2   :  { %12 = vsyncpa [#allocation4], 0 }
   0x3   :  { %14 = vsyncpa [#allocation4 + $0x1], 0  ;;  %s767_s15 = smov 0   ;;  %s769_s16 = smov 0  }
   0x4   :  { %s771_s17 = smov 0   ;;  %s773_s18 = smov 0  }
   0x5 LB: > { %s788_s19 = sadd.s32 4294967295, %s738_s18   ;;  %s564_s20 = sadd.s32 4294967294, %s738_s18   ;;  %s738_s18 = sphi %s773_s18, %s976_s18   ;;  %s734_s17 = sphi %s771_s17, %s975_s17   ;;  %s730_s16 = sphi %s769_s16, %s974_s16   ;;  %s726_s15 = sphi %s767_s15, %s973_s15  }
   0x6   : > { %s792_s21 = sadd.s32 1, %s738_s18   ;;  %s27_s22 = sadd.s32 1, %s734_s17 }
   0x7   : > { %s24_s23 = ssub.s32 %s738_s18, %s792_s21  ;;  %p34_p0 = scmp.ne.s32.totalorder %s734_s17, %s730_s16 }
   0x8   : > { %p25_p1 = scmp.eq.s32.totalorder %s24_s23, 0  ;;  %p35_p2 = scmp.eq.s32.totalorder %s738_s18, 0 }
   0x9   : > { %p40_p3 = scmp.ne.s32.totalorder %s730_s16, %s726_s15  ;;  %p41_p4 = scmp.eq.s32.totalorder %s788_s19, 0 }
   0xa   : > { %s804_s24 = scalar_select %p25_p1, %s734_s17, %s27_s22  }
   0xb   : > { %p806_p5 = por %p35_p2, %p34_p0  ;;  %p810_p6 = por %p41_p4, %p40_p3 }
   0xc   : > { %p132_p7 = scmp.eq.s32.totalorder %s788_s19, 7  ;;  %p138_p8 = scmp.eq.s32.totalorder %s564_s20, 7 }
   0xd   : > { %p605_p9 = scmp.lt.s32.totalorder %s738_s18, 8  ;;  %s164_s29 = sand.u32 1, %s734_s17  }
   0xe   : > { %p816_p10 = por %p132_p7, %p34_p0  ;;  %p820_p11 = por %p138_p8, %p40_p3 }
   0xf   : > { %s590_s30 = sshll.u32 %s738_s18, 4  ;;  %s567_s5 = sshll.u32 %s164_s29, 4 }
  0x10   : > { %s173_s8 = scalar_lea.hbm %s963_s0, %s590_s30  ;;  %s168_s10 = scalar_lea.vmem [#allocation2], %s567_s5 }
  0x11   : > { %s174_s9 = sshll.u32 %s173_s8, 4  ;;  %s176_s11 = sshll.u32 %s168_s10, 4  ;;  %s175_s9 = int_to_ptr.hbm [resolvable:$true] %s174_s9  ;;  %s177_s11 = int_to_ptr.vmem [resolvable:$true] %s176_s11 }
  0x12   : > { %p831_p12 = pnand %p605_p9, %p806_p5  ;;  %p570_p13 = scmp.ge.s32.totalorder %s738_s18, 1 }
  0x13   : > { %p192_p0 = scmp.lt.s32.totalorder %s738_s18, 9  ;;  %s165_s13 = scalar_lea.sflag [#allocation3], %s164_s29 }
  0x14   : > { %s642_s14 = sshra.s32 %s175_s9, 4  ;;  %p646_p2 = pneg %p831_p12  ;;  %s643_s14 = int_to_ptr.hbm [resolvable:$true] %s642_s14 }
  0x15   : > { %s644_s20 = scalar_lea.hbm %s643_s14, 16  ;;  %s649_s25 = scalar_lea.hbm %s963_s0, 128 }
  0x16   : > { %p645_p1 = scmp.ne.s32.totalorder %s643_s14, %s644_s20  ;;  %p650_p5 = scmp.lt.s32.totalorder %s643_s14, %s963_s0 }
  0x17   : > { %p651_p7 = scmp.lt.s32.totalorder %s649_s25, %s644_s20 }
  0x18   : > { %p647_p3 = pnand %p646_p2, %p645_p1 }
  0x19   : > { %p652_p8 = por %p651_p7, %p650_p5 }
  0x1a   : > { %p648_p4 = pneg %p647_p3 }
  0x1c   : > { %p653_p9 = pnand %p652_p8, %p648_p4 }
  0x1e   : > { %656 = shalt.err (!%p653_p9)
}
  0x1f   : > { %s740_s29 = smov 128   ;;  %s741_s6 = smov 8  }
  0x20   : > { %600 = dma.hbm_to_vmem [thread:$0]  (!%p831_p12), %s175_s9, 256, %s177_s11, %s165_s13, %s740_s29, %s740_s29, %s741_s6  }
  0x21   : > { %p193_p1 = pnand %p570_p13, %p192_p0 }
  0x22   : > { %s852_s7 = sand.u32 (!%p193_p1), 1, %s730_s16  }
  0x23   : > { %196 = sbr.rel (%p193_p1) target bundleno = 481 (0x1e1), region = 36  ;;  %s571_s8 = sshll.u32 (!%p193_p1), %s852_s7, 4 }
  0x24   : > { %s199_s10 = scalar_lea.sflag (!%p193_p1), [#allocation3], %s852_s7  ;;  %s202_s14 = scalar_lea.vmem (!%p193_p1), [#allocation2], %s571_s8 }
  0x28   : > { %717 = dma.done.wait (%p810_p6), %s199_s10, 256  }
  0x29   : > { %719 = vsyncadd (%p810_p6), %s199_s10, 4294967040  ;;  %p233_p12 = scmp.lt.s32.totalorder %s788_s19, 7  ;;  %v258_v2 = vld [vmem:[%s202_s14] sm:$0xff]  ;;  %vm262_vm0 = vcmask 130048   ;;  %v259_v3 = vld [vmem:[%s202_s14 + $0x8] sm:$0xff]  ;;  %vm300_vm1 = vcmask 1043456  }
  0x2a   : > { %v238_v4 = vld [vmem:[%s965_s2] sm:$0xf]  ;;  %vm293_vm2 = vcmask 31744   ;;  %v254_v7 = vld [vmem:[%s966_s3 + $0x70] sm:$0xff]  ;;  %v255_v8 = vld [vmem:[%s966_s3 + $0x78] sm:$0xff]  ;;  %vm329_vm3 = vcmask 261120  }
  0x2b   : > { %s234_s9 = scalar_select %p233_p12, %s788_s19, 7  ;;  %578 = vmatpush.msk.msra.mxu1 %vm300_vm1, %v238_v4  ;;  %376 = vmatpush.msra.mxu2 %v254_v7  ;;  %v252_v9 = vld [vmem:[%s966_s3 + $0x60] sm:$0xff]  ;;  %v253_v10 = vld [vmem:[%s966_s3 + $0x68] sm:$0xff]  ;;  %v250_v11 = vld [vmem:[%s966_s3 + $0x50] sm:$0xff]  ;;  %vm360_vm4 = vcmask 1041409   ;;  %vm461_vm5 = vcmask 1041408  }
  0x2c   : > { %396 = vmatpush.msra.mxu3 %v255_v8  ;;  %v251_v12 = vld [vmem:[%s966_s3 + $0x58] sm:$0xff]  ;;  %v248_v13 = vld [vmem:[%s966_s3 + $0x40] sm:$0xff]  ;;  %v249_v14 = vld [vmem:[%s966_s3 + $0x48] sm:$0xff]  ;;  %s572_s29 = sshll.u32 %s852_s7, 2  ;;  %s592_s6 = sshll.u32 %s788_s19, 2 }
  0x2d   : > { %s591_s11 = sshll.u32 %s234_s9, 4  ;;  %377 = vmatpush.msra.mxu2 %v252_v9  ;;  %v247_v15 = vld [vmem:[%s966_s3 + $0x38] sm:$0xff]  ;;  %v246_v16 = vld [vmem:[%s966_s3 + $0x30] sm:$0xff]  ;;  %v245_v17 = vld [vmem:[%s966_s3 + $0x28] sm:$0xff]  ;;  %s477_s14 = scalar_lea.hbm %s967_s4, %s592_s6 }
  0x2e   : > { %s237_s20 = scalar_lea.vmem %s964_s1, %s591_s11  ;;  %397 = vmatpush.msra.mxu3 %v253_v10  ;;  %v244_v18 = vld [vmem:[%s966_s3 + $0x20] sm:$0xff]  ;;  %v243_v20 = vld [vmem:[%s966_s3 + $0x18] sm:$0xff]  ;;  %v242_v21 = vld [vmem:[%s966_s3 + $0x10] sm:$0xff]  ;;  %s232_s9 = scalar_lea.vmem [#allocation5], %s572_s29 }
  0x2f   : > { %v261_v0 = vld [vmem:[%s237_s20 + $0x8] sm:$0xff]  ;;  %v260_v1 = vld [vmem:[%s237_s20] sm:$0xff]  ;;  %378 = vmatpush.msra.mxu2 %v250_v11  ;;  %s479_s11 = sshll.u32 %s232_s9, 4  ;;  %s481_s12 = sshll.u32 %s477_s14, 4  ;;  %s480_s11 = int_to_ptr.vmem [resolvable:$true] %s479_s11  ;;  %s482_s12 = int_to_ptr.hbm [resolvable:$true] %s481_s12 }
  0x30   : > { %283 = vmatpush.msra.mxu0 %v261_v0  ;;  %398 = vmatpush.msra.mxu3 %v251_v12  ;;  %v641_v19 = vld [vmem:[%s965_s2 + $0x4] ss:$0 sm:$0xff]  ;;  %v241_v22 = vld [vmem:[%s966_s3 + $0x8] sm:$0xff]  ;;  %s466_s19 = scalar_lea.sflag [#allocation4], %s852_s7  ;;  %s686_s13 = sshra.s32 %s482_s12, 4  ;;  %s687_s13 = int_to_ptr.hbm [resolvable:$true] %s686_s13 }
  0x31   : > { %379 = vmatpush.msra.mxu2 %v248_v13  ;;  %v240_v23 = vld [vmem:[%s966_s3] sm:$0xff]  ;;  %s688_s20 = scalar_lea.hbm %s687_s13, 4  ;;  %s692_s23 = scalar_lea.hbm %s967_s4, 32 }
  0x32   : > { %284 = vmatpush.msra.mxu0 %v260_v1  ;;  %399 = vmatpush.msra.mxu3 %v249_v14  ;;  %v575_v62 = vld [vmem:[%s966_s3 + $0x80] ss:$8 sm:$0x3]  ;;  %p689_p6 = scmp.ne.s32.totalorder %s687_s13, %s688_s20  ;;  %p693_p2 = scmp.lt.s32.totalorder %s687_s13, %s967_s4 }
  0x33   : > { %576 = vmatmul.msk.f32.vlgmr.msra.gmra.mxu0 %vm262_vm0, %v258_v2  ;;  %421 = vmatpush.msrb.mxu2 %v246_v16  ;;  %v450_v63 = vperm.slane %v575_v62, 0  ;;  %v451_v0 = vperm.slane %v575_v62, 1  ;;  %p694_p3 = scmp.lt.s32.totalorder %s692_s23, %s688_s20 }
  0x34   : > { %441 = vmatpush.msrb.mxu3 %v247_v15  ;;  %p690_p13 = pnand %p689_p6, %p816_p10 }
  0x35   : > { %422 = vmatpush.msrb.mxu2 %v244_v18  ;;  %p695_p4 = por %p694_p3, %p693_p2 }
  0x36   : > { %442 = vmatpush.msrb.mxu3 %v245_v17  ;;  %p691_p0 = pneg %p690_p13 }
  0x37   : > { %423 = vmatpush.msrb.mxu2 %v242_v21 }
  0x38   : > { %443 = vmatpush.msrb.mxu3 %v243_v20  ;;  %p696_p5 = pnand %p695_p4, %p691_p0 }
  0x39   : > { %424 = vmatpush.msrb.mxu2 %v240_v23 }
  0x3a   : > { %444 = vmatpush.msrb.mxu3 %v241_v22 }
  0x3b   : > { %577 = vmatmul.msk.f32.gmra.mxu0 %vm262_vm0, %v259_v3 }
  0xb0   : > { %v286_v5 = vpop.f32.mrf.mxu0 }
  0xb1   : > { %579 = vmatmul.msk.f32.vlgmr.msra.gmra.mxu1 %vm293_vm2, %v286_v5 }
  0xb8   : > { %v289_v6 = vpop.f32.mrf.mxu0 }
  0xb9   : > { %580 = vmatmul.msk.f32.gmra.mxu1 %vm293_vm2, %v289_v6 }
 0x12e   : > { %v321_v24 = vpop.f32.mrf.mxu1 }
 0x12f   : > { %v322_v25 = vadd.f32 %v641_v19, %v321_v24 }
 0x131   : > { %v327_v26 = vmax.f32 %v322_v25, 0.0 }
 0x133   : > { %v344_v27 = vsel %vm329_vm3, %v327_v26, -inf  ;;  %v330_v31 = vsel %vm329_vm3, %v327_v26, 0.0 }
 0x134   : > { %v345_v28 = vrot.slane %v344_v27, 4  ;;  %v331_v34 = vrot.slane %v330_v31, 4 }
 0x136   : > { %v346_v29 = vmax.f32 %v344_v27, %v345_v28  ;;  %v324_v30 = vpop.f32.mrf.mxu1  ;;  %v332_v40 = vadd.f32 %v331_v34, %v330_v31 }
 0x137   : > { %v325_v32 = vadd.f32 %v641_v19, %v324_v30 }
 0x138   : > { %v347_v35 = vrot.slane %v346_v29, 2  ;;  %v333_v46 = vrot.slane %v332_v40, 2 }
 0x139   : > { %v328_v33 = vmax.f32 %v325_v32, 0.0 }
 0x13a   : > { %v348_v41 = vmax.f32 %v346_v29, %v347_v35  ;;  %v334_v51 = vadd.f32 %v333_v46, %v332_v40 }
 0x13b   : > { %v337_v36 = vsel %vm329_vm3, %v328_v33, 0.0  ;;  %v351_v37 = vsel %vm329_vm3, %v328_v33, -inf }
 0x13c   : > { %v338_v38 = vrot.slane %v337_v36, 4  ;;  %v352_v39 = vrot.slane %v351_v37, 4  ;;  %v349_v47 = vrot.slane %v348_v41, 1  ;;  %v335_v56 = vrot.slane %v334_v51, 1 }
 0x13e   : > { %v339_v42 = vadd.f32 %v338_v38, %v337_v36  ;;  %v353_v43 = vmax.f32 %v351_v37, %v352_v39  ;;  %v350_v52 = vmax.f32 %v348_v41, %v349_v47  ;;  %v336_v58 = vadd.f32 %v335_v56, %v334_v51 }
 0x140   : > { %v340_v44 = vrot.slane %v339_v42, 2  ;;  %v354_v45 = vrot.slane %v353_v43, 2 }
 0x142   : > { %v355_v48 = vmax.f32 %v353_v43, %v354_v45  ;;  %v341_v49 = vadd.f32 %v340_v44, %v339_v42 }
 0x144   : > { %v356_v50 = vrot.slane %v355_v48, 1  ;;  %v342_v54 = vrot.slane %v341_v49, 1 }
 0x146   : > { %v357_v53 = vmax.f32 %v355_v48, %v356_v50  ;;  %v343_v57 = vadd.f32 %v342_v54, %v341_v49 }
 0x148   : > { %v361_v55 = vsel %vm360_vm4, %v357_v53, %v350_v52  ;;  %v406_v59 = vsel %vm360_vm4, %v343_v57, %v336_v58 }
 0x149   : > { %581 = vmatmul.msk.f32.vlgmr.msra.gmra.mxu2 %vm329_vm3, %v361_v55  ;;  %582 = vmatmul.msk.f32.vlgmr.msra.gmra.mxu3 %vm329_vm3, %v361_v55 }
 0x151   : > { %583 = vmatmul.msk.f32.vlgmr.msrb.gmra.mxu2 %vm329_vm3, %v406_v59  ;;  %584 = vmatmul.msk.f32.vlgmr.msrb.gmra.mxu3 %vm329_vm3, %v406_v59 }
 0x1cc   : > { %v381_v60 = vpop.f32.mrf.mxu2  ;;  %v401_v61 = vpop.f32.mrf.mxu3 }
 0x1d4   : > { %v426_v1 = vpop.f32.mrf.mxu2  ;;  %v446_v2 = vpop.f32.mrf.mxu3 }
 0x1d5   : > { %v427_v3 = vadd.f32 %v426_v1, %v381_v60  ;;  %v447_v4 = vadd.f32 %v446_v2, %v401_v61 }
 0x1d7   : > { %v454_v5 = vadd.f32 %v450_v63, %v427_v3  ;;  %v455_v6 = vadd.f32 %v451_v0, %v447_v4 }
 0x1d9   : > { %v457_v7 = vmax.f32 %v455_v6, 0.0  ;;  %v456_v8 = vmax.f32 %v454_v5, 0.0 }
 0x1db   : > { %v460_v9 = vrot.slane %v457_v7, 6 }
 0x1dd   : > { %v462_v10 = vsel %vm461_vm5, %v456_v8, %v460_v9 }
 0x1de   : > { %464 = vst [vmem:[%s232_s9] sm:$0xf] %v462_v10 }
 0x1df   : > { %699 = shalt.err (!%p696_p5)
}
 0x1e0   : > { %595 = dma.vmem_to_hbm [thread:$0]  (%p816_p10), %s480_s11, 64, %s482_s12, %s466_s19  }
 0x1e1 PF: > { %p606_p7 = scmp.ge.s32.totalorder %s738_s18, 2  ;;  %s493_s7 = sand.u32 1, %s726_s15  }
 0x1e2   : > { %s494_s5 = scalar_lea.sflag [#allocation4], %s493_s7 }
 0x1e3   : > { %p602_p8 = pnand %p606_p7, %p820_p11 }
 0x1e5   : > { %p603_p9 = pneg %p602_p8 }
 0x1e7   : > { %721 = dma.done.wait (%p603_p9), %s494_s5, 64  }
 0x1e8   : > { %723 = vsyncadd (%p603_p9), %s494_s5, 4294967232  ;;  %p17_p1 = scmp.ge.s32.totalorder %s792_s21, 10   ;;  %s973_s15 = smov %s730_s16 }
 0x1e9   : > { %s974_s16 = smov %s734_s17  ;;  %s975_s17 = smov %s804_s24 }
 0x1ea   : > { %s976_s18 = smov %s792_s21  ;;  %19 = sbr.rel (!%p17_p1) target bundleno = 5 (0x5), region = 85 }
 0x1ef   :  { %500 = vsyncpa [#allocation3], 1 }
 0x1f0   :  { %502 = vsyncpa [#allocation3 + $0x1], 1 }
 0x1f1   :  { %503 = vsyncpa [#allocation4], 1 }
 0x1f2   :  { %505 = vsyncpa [#allocation4 + $0x1], 1 }

</bundles_post_ra>
